<compile_context>
chip_gen: v6e
topology: v6e:2x2x1
jax: 0.10.0
libtpu: 0.0.40
codegen_flags: <defaults>
</compile_context>

<pallas_src>
import functools

import jax
import jax.numpy as jnp
from jax.experimental import pallas as pl
from jax.experimental.pallas import tpu as pltpu


def _round_up(x: int, m: int) -> int:
    return ((x + m - 1) // m) * m


def _choose_tiles(n: int, row_cap: int = 512, k_cap: int = 2048):
    """Pick (N_pad, row_tile, k_tile) decoupled from N's 128-divisibility.

    Row tile: largest multiple of 128 <= row_cap whose padding overhead is
    <= ~12.5% of the rows and which leaves >= 2 row steps (v7x megacore)
    whenever the problem is big enough.  N is padded to a multiple of the
    row tile; the K tile is the largest multiple of the row tile (<= k_cap)
    that divides N_pad.
    """
    n128 = _round_up(n, 128)
    row_tile = 128
    t = 128
    while t <= min(row_cap, n128):
        n_pad_t = _round_up(n128, t)
        pad_ok = (n_pad_t - n128) * 8 <= n128          # <= 12.5% extra rows
        two_steps = (n_pad_t // t) >= 2                 # keep both v7x TCs busy
        if pad_ok and (two_steps or n128 <= 128):
            row_tile = t
        t += 128
    n_pad = _round_up(n128, row_tile)
    k_tile = row_tile
    t = row_tile
    while t <= min(k_cap, n_pad):
        if n_pad % t == 0:
            k_tile = t
        t += row_tile
    return n_pad, row_tile, k_tile


# ----------------------- fused kernel: out = adj @ act(feat @ wT) ----------
def _gnn_fused_kernel(adj_ref, feat_ref, wt_ref, out_ref, *,
                      active: bool, k_tile: int, feats_resident: bool):
    k = pl.program_id(1)

    # The output block index is constant along the K ("arbitrary") axis, so
    # out_ref stays VMEM-resident and doubles as the f32 accumulator.
    @pl.when(k == 0)
    def _():
        out_ref[...] = jnp.zeros_like(out_ref)

    if feats_resident:
        # Whole feature matrix lives in VMEM; slice out this K tile's rows.
        start = pl.multiple_of(k * k_tile, k_tile)
        feat = feat_ref[pl.ds(start, k_tile), :]
    else:
        feat = feat_ref[...]

    # support tile = act(feat_k @ wT)  (recomputed per row tile; MXU work is
    # hidden under the adj HBM stream since the kernel is memory-bound).
    support = jnp.dot(feat, wt_ref[...], preferred_element_type=jnp.float32)
    if active:
        support = jnp.tanh(support)

    out_ref[...] += jnp.dot(adj_ref[...], support.astype(adj_ref.dtype),
                            preferred_element_type=jnp.float32)


def gnn_layer(features: jax.Array, adj: jax.Array, w: jax.Array,
              active: bool = True, *, compute_dtype=jnp.float32,
              row_cap: int = 512, k_cap: int = 2048) -> jax.Array:
    """JAX/Pallas equivalent of GNNLayer.forward(features, adj, active)."""
    N, in_features = features.shape
    out_features, in_features_w = w.shape
    assert in_features == in_features_w
    assert adj.shape == (N, N)

    N_pad, row_tile, k_tile = _choose_tiles(N, row_cap, k_cap)
    in_pad = _round_up(in_features, 128)
    out_pad = _round_up(out_features, 128)
    dsz = jnp.dtype(compute_dtype).itemsize

    # Generation-aware VMEM budget (v7x: 64 MiB/TC; v5e/v6e: 128 MiB).
    try:
        vmem_cap = int(pltpu.get_tpu_info().vmem_capacity_bytes)
    except Exception:
        vmem_cap = 64 * 2**20
    vmem_budget = (vmem_cap * 3) // 4

    # Keep the whole (padded) feature matrix VMEM-resident when cheap: it is
    # then DMA'd exactly once instead of once per row tile.
    feats_resident = 2 * N_pad * in_pad * dsz <= min(16 * 2**20, vmem_budget // 3)
    feat_block_rows = N_pad if feats_resident else k_tile

    vmem_needed = 2 * (row_tile * k_tile * dsz            # adj tile
                       + feat_block_rows * in_pad * dsz   # features
                       + in_pad * out_pad * dsz           # wT (constant)
                       + row_tile * out_pad * 4)          # f32 out/accumulator
    vmem_limit = int(min(vmem_budget, max(vmem_needed + (8 << 20), 32 << 20)))

    # Cast only when necessary (avoid an extra un-hidden pass over N^2 adj).
    cdt = jnp.dtype(compute_dtype)
    feats = features if features.dtype == cdt else features.astype(cdt)
    adj_c = adj if adj.dtype == cdt else adj.astype(cdt)
    wt = jnp.transpose(w).astype(cdt)                     # (in, out): MXU-ready

    # Zero padding is exact: padded feature rows/cols give support rows of
    # exactly 0 (tanh(0)=0), and padded adj rows/cols are zero.
    if N_pad != N or in_pad != in_features:
        feats = jnp.pad(feats, ((0, N_pad - N), (0, in_pad - in_features)))
    if N_pad != N:
        adj_c = jnp.pad(adj_c, ((0, N_pad - N), (0, N_pad - N)))
    if in_pad != in_features or out_pad != out_features:
        wt = jnp.pad(wt, ((0, in_pad - in_features), (0, out_pad - out_features)))

    if feats_resident:
        feat_spec = pl.BlockSpec((N_pad, in_pad), lambda i, k: (0, 0))
    else:
        feat_spec = pl.BlockSpec((k_tile, in_pad), lambda i, k: (k, 0))

    kernel = functools.partial(_gnn_fused_kernel, active=bool(active),
                               k_tile=k_tile, feats_resident=feats_resident)

    out_padded = pl.pallas_call(
        kernel,
        out_shape=jax.ShapeDtypeStruct((N_pad, out_pad), jnp.float32),
        grid_spec=pltpu.PrefetchScalarGridSpec(
            num_scalar_prefetch=0,
            grid=(N_pad // row_tile, N_pad // k_tile),
            in_specs=[
                pl.BlockSpec((row_tile, k_tile), lambda i, k: (i, k)),   # adj
                feat_spec,                                               # features
                pl.BlockSpec((in_pad, out_pad), lambda i, k: (0, 0)),    # wT
            ],
            out_specs=pl.BlockSpec((row_tile, out_pad), lambda i, k: (i, 0)),
        ),
        compiler_params=pltpu.CompilerParams(
            dimension_semantics=("parallel", "arbitrary"),
            vmem_limit_bytes=vmem_limit,
        ),
    )(adj_c, feats, wt)

    return out_padded[:N, :out_features]


# ------------------------------- demo / check -------------------------------
def _reference(features, adj, w, active):
    support = features @ w.T
    if active:
        support = jnp.tanh(support)
    return adj @ support


def _make_inputs(key, n, in_f, out_f):
    k_feat, k_adj, k_w = jax.random.split(key, 3)
    features = jax.random.normal(k_feat, (n, in_f), dtype=jnp.float32)
    adj_raw = jax.random.uniform(k_adj, (n, n), dtype=jnp.float32)
    adj = adj_raw / jnp.sum(adj_raw, axis=-1, keepdims=True)  # row-normalized
    # xavier_uniform_ for a (out, in) weight.
    a = (6.0 / (in_f + out_f)) ** 0.5
    w = jax.random.uniform(k_w, (out_f, in_f), dtype=jnp.float32,
                           minval=-a, maxval=a)
    return features, adj, w


if __name__ == "__main__":
    root = jax.random.PRNGKey(0)

    # Case 1: aligned shapes, active and inactive paths.
    f1, a1, w1 = _make_inputs(jax.random.fold_in(root, 1), 256, 64, 32)
    o1 = gnn_layer(f1, a1, w1, active=True)
    jax.block_until_ready(o1)
    assert o1.shape == (256, 32)
    assert jnp.allclose(o1, _reference(f1, a1, w1, True), atol=1e-4, rtol=1e-4)

    o1b = gnn_layer(f1, a1, w1, active=False)
    jax.block_until_ready(o1b)
    assert jnp.allclose(o1b, _reference(f1, a1, w1, False), atol=1e-4, rtol=1e-4)

    # Case 2: multiple row tiles (grid[0] >= 2 keeps both v7x cores busy).
    f2, a2, w2 = _make_inputs(jax.random.fold_in(root, 2), 512, 64, 32)
    o2 = gnn_layer(f2, a2, w2, active=True)
    jax.block_until_ready(o2)
    assert jnp.allclose(o2, _reference(f2, a2, w2, True), atol=1e-4, rtol=1e-4)

    # Case 3: unaligned N / in_features / out_features exercise padding.
    f3, a3, w3 = _make_inputs(jax.random.fold_in(root, 3), 200, 48, 20)
    o3 = gnn_layer(f3, a3, w3, active=True)
    jax.block_until_ready(o3)
    assert o3.shape == (200, 20)
    assert jnp.allclose(o3, _reference(f3, a3, w3, True), atol=1e-4, rtol=1e-4)

    # Case 4: opt-in bf16 compute (f32 accumulation), loose tolerance.
    o4 = gnn_layer(f1, a1, w1, active=True, compute_dtype=jnp.bfloat16)
    jax.block_until_ready(o4)
    assert jnp.allclose(o4, _reference(f1, a1, w1, True), atol=5e-2, rtol=5e-2)

    print("KERNEL_OK")
</pallas_src>

<mosaic_0001>
module attributes {stable_mosaic.version = 11 : i64} {
  func.func @_gnn_fused_kernel(%arg0: i32, %arg1: i32, %arg2: memref<128x256xf32, #tpu.memory_space<vmem>>, %arg3: memref<256x128xf32, #tpu.memory_space<vmem>>, %arg4: memref<128x128xf32, #tpu.memory_space<vmem>>, %arg5: memref<128x128xf32, #tpu.memory_space<vmem>>) attributes {dimension_semantics = [#tpu.dimension_semantics<parallel>, #tpu.dimension_semantics<arbitrary>], iteration_bounds = array<i64: 2, 1>, scalar_prefetch = 0 : i64, scratch_operands = 0 : i64, tpu.core_type = #tpu.core_type<tc>, window_params = [{transform_indices = @transform_0, window_bounds = array<i64: 128, 256>}, {pipeline_mode = #tpu.pipeline_mode<synchronous>, transform_indices = @transform_1, window_bounds = array<i64: 256, 128>}, {pipeline_mode = #tpu.pipeline_mode<synchronous>, transform_indices = @transform_2, window_bounds = array<i64: 128, 128>}, {transform_indices = @transform_3, window_bounds = array<i64: 128, 128>}]} {
    %c0_i32 = arith.constant 0 : i32
    %0 = arith.cmpi eq, %arg1, %c0_i32 : i32
    %1 = arith.extui %0 : i1 to i32
    %c0_i32_0 = arith.constant 0 : i32
    %2 = arith.cmpi ne, %1, %c0_i32_0 : i32
    scf.if %2 {
      %cst_10 = arith.constant 0.000000e+00 : f32
      %15 = vector.broadcast %cst_10 : f32 to vector<128x128xf32>
      %c0_11 = arith.constant 0 : index
      %c0_12 = arith.constant 0 : index
      %16 = vector.load %arg5[%c0_11, %c0_12] : memref<128x128xf32, #tpu.memory_space<vmem>>, vector<128x128xf32>
      tpu.vector_store %arg5[%c0_11, %c0_12], %15 {strides = array<i32>} : memref<128x128xf32, #tpu.memory_space<vmem>>, vector<128x128xf32>,
    } else {
    }
    %c256_i32 = arith.constant 256 : i32
    %3 = arith.muli %arg1, %c256_i32 : i32
    %4 = tpu.assume_multiple %3, 256 : i32
    %5 = arith.index_cast %4 : i32 to index
    %c0 = arith.constant 0 : index
    %6 = vector.load %arg3[%5, %c0] : memref<256x128xf32, #tpu.memory_space<vmem>>, vector<256x128xf32>
    %c0_1 = arith.constant 0 : index
    %c0_2 = arith.constant 0 : index
    %7 = vector.load %arg4[%c0_1, %c0_2] : memref<128x128xf32, #tpu.memory_space<vmem>>, vector<128x128xf32>
    %cst = arith.constant dense<0.000000e+00> : vector<256x128xf32>
    %8 = tpu.matmul %6, %7, %cst {dimension_numbers = #tpu.dot_dimension_numbers<[1], [0], [0], [1], [0, 0, 1, 1], [], []>} : vector<256x128xf32>, vector<128x128xf32>, vector<256x128xf32> -> vector<256x128xf32>
    %9 = math.tanh %8 : vector<256x128xf32>
    %c0_3 = arith.constant 0 : index
    %c0_4 = arith.constant 0 : index
    %10 = vector.load %arg5[%c0_3, %c0_4] : memref<128x128xf32, #tpu.memory_space<vmem>>, vector<128x128xf32>
    %c0_5 = arith.constant 0 : index
    %c0_6 = arith.constant 0 : index
    %11 = vector.load %arg2[%c0_5, %c0_6] : memref<128x256xf32, #tpu.memory_space<vmem>>, vector<128x256xf32>
    %cst_7 = arith.constant dense<0.000000e+00> : vector<128x128xf32>
    %12 = tpu.matmul %11, %9, %cst_7 {dimension_numbers = #tpu.dot_dimension_numbers<[1], [0], [0], [1], [0, 0, 1, 1], [], []>} : vector<128x256xf32>, vector<256x128xf32>, vector<128x128xf32> -> vector<128x128xf32>
    %13 = arith.addf %10, %12 : vector<128x128xf32>
    %c0_8 = arith.constant 0 : index
    %c0_9 = arith.constant 0 : index
    %14 = vector.load %arg5[%c0_8, %c0_9] : memref<128x128xf32, #tpu.memory_space<vmem>>, vector<128x128xf32>
    tpu.vector_store %arg5[%c0_8, %c0_9], %13 {strides = array<i32>} : memref<128x128xf32, #tpu.memory_space<vmem>>, vector<128x128xf32>,
    return
  }
  func.func @transform_0(%arg0: i32, %arg1: i32) -> (i32, i32) {
    %c0_i32 = arith.constant 0 : i32
    return %arg0, %arg1 : i32, i32
  }
  func.func @transform_1(%arg0: i32, %arg1: i32) -> (i32, i32) {
    %c0_i32 = arith.constant 0 : i32
    %c0_i32_0 = arith.constant 0 : i32
    %c0_i32_1 = arith.constant 0 : i32
    return %c0_i32, %c0_i32_0 : i32, i32
  }
  func.func @transform_2(%arg0: i32, %arg1: i32) -> (i32, i32) {
    %c0_i32 = arith.constant 0 : i32
    %c0_i32_0 = arith.constant 0 : i32
    %c0_i32_1 = arith.constant 0 : i32
    return %c0_i32, %c0_i32_0 : i32, i32
  }
  func.func @transform_3(%arg0: i32, %arg1: i32) -> (i32, i32) {
    %c0_i32 = arith.constant 0 : i32
    %c0_i32_0 = arith.constant 0 : i32
    return %arg0, %c0_i32 : i32, i32
  }
}

</mosaic_0001>

<bundles_post_ra>
// kernel: tpu_custom_call.1
= control target key start
LH: loop header
LB: loop body
LE: loop exit
PB: predicated region body
PF: predicated region fallthrough
CT: control target
= control target key end

     0   :  { %8 = vsyncpa [#allocation3], 0  ;;  %s1759_s0 = inlined_call_operand.hbm [shape: f32[256,256], index: 0, kind: input, shape index: {}]   ;;  %s1760_s1 = inlined_call_operand.hbm [shape: f32[256,128], index: 1, kind: input, shape index: {}]   ;;  %s1761_s2 = inlined_call_operand.hbm [shape: f32[128,128], index: 2, kind: input, shape index: {}]   ;;  %s1762_s3 = inlined_call_operand.hbm [shape: f32[256,128], index: 3, kind: output, shape index: {}]  }
   0x1   :  { %10 = vsyncpa [#allocation3 + $0x1], 0 }
   0x2   :  { %11 = vsyncpa [#allocation6], 0 }
   0x3   :  { %12 = vsyncpa [#allocation4], 0 }
   0x4   :  { %14 = vsyncpa [#allocation4 + $0x1], 0  ;;  %s1490_s12 = smov 0   ;;  %s1492_s13 = smov 0  }
   0x5   :  { %s1494_s14 = smov 0   ;;  %s1496_s15 = smov 0  }
   0x6   :  { %s1498_s16 = smov 0   ;;  %s1500_s17 = smov 0  }
   0x7 LB: > { %s909_s18 = sadd.s32 4294967295, %s1458_s17   ;;  %s910_s19 = sadd.s32 4294967294, %s1458_s17   ;;  %s1458_s17 = sphi %s1500_s17, %s20_s17   ;;  %s1454_s16 = sphi %s1498_s16, %s1782_s16   ;;  %s1450_s15 = sphi %s1496_s15, %s1781_s15   ;;  %s1446_s14 = sphi %s1494_s14, %s1780_s14   ;;  %s1442_s13 = sphi %s1492_s13, %s1779_s13   ;;  %s1438_s12 = sphi %s1490_s12, %s1778_s12  }
   0x8   : > { %p54_p0 = scmp.ne.s32.totalorder %s1442_s13, %s1438_s12  ;;  %p1524_p1 = scmp.eq.s32.totalorder %s909_s18, 0 }
   0x9   : > { %p1528_p2 = scmp.eq.s32.totalorder %s909_s18, 1  ;;  %p126_p3 = scmp.eq.s32.totalorder %s910_s19, 1 }
   0xa   : > { %s1766_s20 = scalar_select %p1524_p1, 1, 0 }
   0xb   : > { %p1534_p4 = por %p1524_p1, %p54_p0  ;;  %p911_p5 = scmp.ge.s32.totalorder %s1458_s17, 1 }
   0xc   : > { %p1539_p6 = por %p126_p3, %p54_p0  ;;  %p133_p7 = scmp.lt.s32.totalorder %s1458_s17, 3 }
   0xd   : > { %s1768_s22 = scalar_select %p1534_p4, 1, 0 }
   0xe   : > { %s1769_s23 = scalar_select %p1539_p6, 1, 0 }
   0xf   : > { %p1544_p8 = pnand %p911_p5, %p133_p7  ;;  %s1460_s25 = smov [#allocation5]  }
  0x10   : > { %s145_s26 = sshll.u32 %s1460_s25, 4  ;;  %s1461_s28 = smov [#allocation7]   ;;  %s146_s26 = int_to_ptr.vmem [resolvable:$true] %s145_s26 }
  0x11   : > { %p1152_p9 = pneg %p1544_p8  ;;  %s158_s29 = sshll.u32 %s1461_s28, 4  ;;  %s159_s29 = int_to_ptr.vmem [resolvable:$true] %s158_s29 }
  0x12   : > { %s1305_s30 = scalar_lea.vmem %s146_s26, 4096  ;;  %p1313_p5 = scmp.lt.s32.totalorder %s146_s26, %s146_s26 }
  0x13   : > { %p1553_p11 = pnand %p1152_p9, %p1524_p1  ;;  %p1306_p13 = scmp.ne.s32.totalorder %s146_s26, %s1305_s30 }
  0x14   : > { %p1314_p7 = scmp.lt.s32.totalorder %s1305_s30, %s1305_s30 }
  0x15   : > { %p1296_p12 = pneg %p1553_p11 }
  0x16   : > { %p1315_p10 = por %p1314_p7, %p1313_p5 }
  0x17   : > { %p1308_p0 = pnand %p1306_p13, %p1296_p12 }
  0x19   : > { %p1309_p3 = pneg %p1308_p0 }
  0x1b   : > { %p1316_p9 = pnand %p1315_p10, %p1309_p3 }
  0x1d   : > { %1319 = shalt.err (!%p1316_p9)
}
  0x1e   : > { %s1462_s4 = smov 128   ;;  %s1463_s5 = smov 8  }
  0x1f   : > { %1155 = dma.hbm_to_vmem [thread:$0]  (!%p1553_p11), %s1760_s1, 4096, %s146_s26, [#allocation6], %s1462_s4, %s1462_s4, %s1463_s5  }
  0x20   : > { %s1331_s8 = scalar_lea.vmem %s159_s29, 2048  ;;  %p1339_p1 = scmp.lt.s32.totalorder %s159_s29, %s159_s29 }
  0x21   : > { %p1332_p6 = scmp.ne.s32.totalorder %s159_s29, %s1331_s8  ;;  %p1340_p4 = scmp.lt.s32.totalorder %s1331_s8, %s1331_s8 }
  0x23   : > { %p1334_p13 = pnand %p1332_p6, %p1296_p12  ;;  %p1341_p5 = por %p1340_p4, %p1339_p1 }
  0x25   : > { %p1335_p0 = pneg %p1334_p13 }
  0x27   : > { %p1342_p10 = pnand %p1341_p5, %p1335_p0 }
  0x29   : > { %1345 = shalt.err (!%p1342_p10)
}
  0x2a   : > { %1158 = dma.hbm_to_vmem [thread:$0]  (!%p1553_p11), %s1761_s2, 2048, %s159_s29, [#allocation6], %s1462_s4, %s1462_s4, %s1463_s5  }
  0x2b   : > { %s32_s11 = sadd.s32 1, %s1454_s16  ;;  %s41_s18 = sadd.s32 1, %s1446_s14 }
  0x2c   : > { %p34_p1 = scmp.ge.s32.totalorder %s32_s11, 2  ;;  %p48_p4 = scmp.ne.s32.totalorder %s1446_s14, %s1442_s13 }
  0x2d   : > { %p49_p6 = scmp.eq.s32.totalorder %s1458_s17, 0  ;;  %p1169_p12 = scmp.lt.s32.totalorder %s1458_s17, 2 }
  0x2e   : > { %s1784_s11 = smov (%p34_p1, %s32_s11), 0  ;;  %p1585_p7 = por %p1528_p2, %p48_p4 }
  0x2f   : > { %p50_p3 = por %p49_p6, %p48_p4  ;;  %s36_s25 = ssub.s32 %s1454_s16, %s1784_s11 }
  0x30   : > { %s172_s26 = sand.u32 1, %s1446_s14   ;;  %p39_p9 = scmp.eq.s32.totalorder %s36_s25, 0 }
  0x31   : > { %s915_s27 = sshll.u32 %s172_s26, 8  ;;  %s930_s28 = sshll.u32 %s1454_s16, 12 }
  0x32   : > { %s1594_s29 = scalar_select %p39_p9, %s1446_s14, %s41_s18  }
  0x33   : > { %s185_s5 = scalar_lea.hbm %s1759_s0, %s930_s28  ;;  %s176_s6 = scalar_lea.vmem [#allocation2], %s915_s27 }
  0x34   : > { %s186_s7 = sshll.u32 %s176_s6, 4  ;;  %p1601_p11 = pnand %p1169_p12, %p50_p3  ;;  %s187_s7 = int_to_ptr.vmem [resolvable:$true] %s186_s7 }
  0x35   : > { %s173_s8 = scalar_lea.sflag [#allocation3], %s172_s26  ;;  %s1359_s9 = scalar_lea.vmem %s187_s7, 4096 }
  0x36   : > { %p1348_p2 = pneg %p1601_p11  ;;  %p1360_p13 = scmp.ne.s32.totalorder %s187_s7, %s1359_s9 }
  0x37   : > { %s1464_s10 = smov [#allocation2]  }
  0x38   : > { %p1362_p0 = pnand %p1360_p13, %p1348_p2  ;;  %s1364_s18 = sshll.u32 %s1464_s10, 4  ;;  %s1365_s18 = int_to_ptr.vmem [resolvable:$false] %s1364_s18 }
  0x39   : > { %s1366_s25 = scalar_lea.vmem %s1365_s18, 8192  ;;  %p1367_p10 = scmp.lt.s32.totalorder %s187_s7, %s1365_s18 }
  0x3a   : > { %p1363_p5 = pneg %p1362_p0  ;;  %p1368_p1 = scmp.lt.s32.totalorder %s1366_s25, %s1359_s9 }
  0x3c   : > { %p1369_p4 = por %p1368_p1, %p1367_p10 }
  0x3e   : > { %p1370_p6 = pnand %p1369_p4, %p1363_p5 }
  0x40   : > { %1373 = shalt.err (!%p1370_p6)
}
  0x41   : > { %s1465_s27 = smov 256   ;;  %s1466_s28 = smov 16  }
  0x42   : > { %1162 = dma.hbm_to_vmem [thread:$0]  (!%p1601_p11), %s185_s5, 4096, %s187_s7, %s173_s8, %s1465_s27, %s1465_s27, %s1466_s28  }
  0x43   : > { %198 = sbr.rel (%p1544_p8) target bundleno = 679 (0x2a7), region = 32  ;;  %s1612_s26 = sand.u32 (!%p1544_p8), 1, %s1442_s13  }
  0x44   : > { %s920_s30 = sshll.u32 (!%p1544_p8), %s1612_s26, 8  ;;  %s201_s4 = scalar_lea.sflag (!%p1544_p8), [#allocation3], %s1612_s26 }
  0x45   : > { %s1616_s6 = scalar_lea.vmem (!%p1544_p8), [#allocation2], %s920_s30  ;;  %p1774_p12 = scmp.ne.s32.totalorder (!%p1544_p8), %s1768_s22, 0 }
  0x48   : > { %1425 = dma.done.wait (%p1774_p12), %s201_s4, 4096  }
  0x49   : > { %1427 = vsyncadd (%p1774_p12), %s201_s4, 4294963200  ;;  %p1775_p3 = scmp.ne.s32.totalorder %s1766_s20, 0 }
  0x4b   : > { %1429 = dma.done.wait (%p1775_p3), [#allocation6], 6144  }
  0x4c   : > { %1431 = vsyncadd (%p1775_p3), [#allocation6], 4294961152  ;;  %v307_v0 = vld [vmem:[#allocation7 + $0x78] sm:$0xff]  ;;  %v306_v1 = vld [vmem:[#allocation7 + $0x70] sm:$0xff]  ;;  %s923_s20 = sshll.u32 %s1612_s26, 7  ;;  %s931_s24 = sshll.u32 %s1450_s15, 11 }
  0x4d   : > { %1060 = vmatprep.subr.mxu0 %v307_v0  ;;  %v305_v2 = vld [vmem:[#allocation7 + $0x68] sm:$0xff]  ;;  %v304_v3 = vld [vmem:[#allocation7 + $0x60] sm:$0xff]  ;;  %v303_v5 = vld [vmem:[#allocation7 + $0x58] sm:$0xff]  ;;  %s1686_s22 = scalar_lea.vmem [#allocation8], %s923_s20  ;;  %s1708_s8 = scalar_lea.hbm %s1762_s3, %s931_s24 }
  0x4e   : > { %1061 = vmatpush3.msra.mxu0 %v307_v0  ;;  %v260_v4 = vld [vmem:[#allocation5] sm:$0xff]  ;;  %v302_v6 = vld [vmem:[#allocation7 + $0x50] sm:$0xff]  ;;  %v301_v7 = vld [vmem:[#allocation7 + $0x48] sm:$0xff]  ;;  %s804_s5 = sshll.u32 %s1686_s22, 4  ;;  %s791_s9 = scalar_lea.sflag [#allocation4], %s1612_s26  ;;  %s1710_s5 = int_to_ptr.vmem [resolvable:$true] %s804_s5 }
  0x4f   : > { %1062 = vmatprep.subr.mxu0 %v306_v1  ;;  %1092 = vmatprep.mubr.f32.mxu0 %v260_v4  ;;  %v300_v8 = vld [vmem:[#allocation7 + $0x40] sm:$0xff]  ;;  %v299_v9 = vld [vmem:[#allocation7 + $0x38] sm:$0xff]  ;;  %v298_v10 = vld [vmem:[#allocation7 + $0x30] sm:$0xff]  ;;  %s1374_s10 = scalar_lea.vmem %s1710_s5, 2048  ;;  %s1467_s15 = smov [#allocation8]  }
  0x50   : > { %1063 = vmatpush3.msra.mxu0 %v306_v1  ;;  %v297_v11 = vld [vmem:[#allocation7 + $0x28] sm:$0xff]  ;;  %v296_v12 = vld [vmem:[#allocation7 + $0x20] sm:$0xff]  ;;  %v295_v13 = vld [vmem:[#allocation7 + $0x18] sm:$0xff]  ;;  %p1375_p8 = scmp.ne.s32.totalorder %s1710_s5, %s1374_s10  ;;  %s1378_s18 = sshll.u32 %s1467_s15, 4  ;;  %s1379_s18 = int_to_ptr.vmem [resolvable:$false] %s1378_s18 }
  0x51   : > { %1064 = vmatprep.subr.mxu0 %v305_v2  ;;  %v294_v14 = vld [vmem:[#allocation7 + $0x10] sm:$0xff]  ;;  %v293_v15 = vld [vmem:[#allocation7 + $0x8] sm:$0xff]  ;;  %v292_v16 = vld [vmem:[#allocation7] sm:$0xff]  ;;  %s1380_s25 = scalar_lea.vmem %s1379_s18, 4096  ;;  %p1381_p2 = scmp.lt.s32.totalorder %s1710_s5, %s1379_s18 }
  0x52   : > { %1065 = vmatpush3.msra.mxu0 %v305_v2  ;;  %v261_v17 = vld [vmem:[#allocation5 + $0x8] sm:$0xff]  ;;  %v262_v18 = vld [vmem:[#allocation5 + $0x10] sm:$0xff]  ;;  %v263_v19 = vld [vmem:[#allocation5 + $0x18] sm:$0xff]  ;;  %p1376_p9 = pnand %p1375_p8, %p1585_p7  ;;  %p1382_p13 = scmp.lt.s32.totalorder %s1380_s25, %s1374_s10 }
  0x53   : > { %1066 = vmatprep.subr.mxu0 %v304_v3  ;;  %v264_v20 = vld [vmem:[#allocation5 + $0x20] sm:$0xff]  ;;  %v265_v21 = vld [vmem:[#allocation5 + $0x28] sm:$0xff]  ;;  %v266_v22 = vld [vmem:[#allocation5 + $0x30] sm:$0xff] }
  0x54   : > { %1067 = vmatpush3.msra.mxu0 %v304_v3  ;;  %v267_v23 = vld [vmem:[#allocation5 + $0x38] sm:$0xff]  ;;  %v268_v24 = vld [vmem:[#allocation5 + $0x40] sm:$0xff]  ;;  %v269_v25 = vld [vmem:[#allocation5 + $0x48] sm:$0xff]  ;;  %p1377_p11 = pneg %p1376_p9  ;;  %p1383_p0 = por %p1382_p13, %p1381_p2 }
  0x55   : > { %1068 = vmatprep.subr.mxu0 %v303_v5  ;;  %v270_v26 = vld [vmem:[#allocation5 + $0x50] sm:$0xff]  ;;  %v271_v27 = vld [vmem:[#allocation5 + $0x58] sm:$0xff]  ;;  %v272_v28 = vld [vmem:[#allocation5 + $0x60] sm:$0xff] }
  0x56   : > { %1069 = vmatpush3.msra.mxu0 %v303_v5  ;;  %v273_v29 = vld [vmem:[#allocation5 + $0x68] sm:$0xff]  ;;  %v274_v30 = vld [vmem:[#allocation5 + $0x70] sm:$0xff]  ;;  %v275_v31 = vld [vmem:[#allocation5 + $0x78] sm:$0xff]  ;;  %p1384_p5 = pnand %p1383_p0, %p1377_p11 }
  0x57   : > { %1070 = vmatprep.subr.mxu0 %v302_v6  ;;  %v276_v32 = vld [vmem:[#allocation5 + $0x80] sm:$0xff]  ;;  %v277_v33 = vld [vmem:[#allocation5 + $0x88] sm:$0xff]  ;;  %v278_v34 = vld [vmem:[#allocation5 + $0x90] sm:$0xff] }
  0x58   : > { %1071 = vmatpush3.msra.mxu0 %v302_v6  ;;  %v279_v35 = vld [vmem:[#allocation5 + $0x98] sm:$0xff]  ;;  %v280_v36 = vld [vmem:[#allocation5 + $0xa0] sm:$0xff]  ;;  %v281_v37 = vld [vmem:[#allocation5 + $0xa8] sm:$0xff] }
  0x59   : > { %1072 = vmatprep.subr.mxu0 %v301_v7  ;;  %v282_v38 = vld [vmem:[#allocation5 + $0xb0] sm:$0xff]  ;;  %v283_v39 = vld [vmem:[#allocation5 + $0xb8] sm:$0xff]  ;;  %v284_v40 = vld [vmem:[#allocation5 + $0xc0] sm:$0xff] }
  0x5a   : > { %1073 = vmatpush3.msra.mxu0 %v301_v7  ;;  %v285_v41 = vld [vmem:[#allocation5 + $0xc8] sm:$0xff]  ;;  %v286_v42 = vld [vmem:[#allocation5 + $0xd0] sm:$0xff]  ;;  %v287_v43 = vld [vmem:[#allocation5 + $0xd8] sm:$0xff] }
  0x5b   : > { %1074 = vmatprep.subr.mxu0 %v300_v8  ;;  %v288_v44 = vld [vmem:[#allocation5 + $0xe0] sm:$0xff]  ;;  %v289_v45 = vld [vmem:[#allocation5 + $0xe8] sm:$0xff]  ;;  %v290_v46 = vld [vmem:[#allocation5 + $0xf0] sm:$0xff] }
  0x5c   : > { %1075 = vmatpush3.msra.mxu0 %v300_v8  ;;  %v291_v47 = vld [vmem:[#allocation5 + $0xf8] sm:$0xff]  ;;  %v582_v48 = vld [vmem:[%s1616_s6 + $0x8] sm:$0xff] }
  0x5d   : > { %1076 = vmatprep.subr.mxu0 %v299_v9  ;;  %677 = vmatprep.mubr.f32.mxu1 %v582_v48  ;;  %v581_v48 = vld [vmem:[%s1616_s6] sm:$0xff] }
  0x5e   : > { %1077 = vmatpush3.msra.mxu0 %v299_v9 }
  0x5f   : > { %1078 = vmatprep.subr.mxu0 %v298_v10 }
  0x60   : > { %1079 = vmatpush3.msra.mxu0 %v298_v10 }
  0x61   : > { %1080 = vmatprep.subr.mxu0 %v297_v11 }
  0x62   : > { %1081 = vmatpush3.msra.mxu0 %v297_v11 }
  0x63   : > { %1082 = vmatprep.subr.mxu0 %v296_v12 }
  0x64   : > { %1083 = vmatpush3.msra.mxu0 %v296_v12 }
  0x65   : > { %1084 = vmatprep.subr.mxu0 %v295_v13 }
  0x66   : > { %1085 = vmatpush3.msra.mxu0 %v295_v13 }
  0x67   : > { %1086 = vmatprep.subr.mxu0 %v294_v14 }
  0x68   : > { %1087 = vmatpush3.msra.mxu0 %v294_v14 }
  0x69   : > { %1088 = vmatprep.subr.mxu0 %v293_v15 }
  0x6a   : > { %1089 = vmatpush3.msra.mxu0 %v293_v15 }
  0x6b   : > { %1090 = vmatprep.subr.mxu0 %v292_v16 }
  0x6c   : > { %1091 = vmatpush3.msra.mxu0 %v292_v16 }
  0x6d   : > { %1093 = vmatmul.mubr.f32.vlgmr.msra.gmra.mxu0 %v261_v17 }
  0x6e   : > { %1095 = vmatprep.mubr.f32.mxu0 %v262_v18 }
  0x71   : > { %1096 = vmatmul.mubr.f32.gmra.mxu0 %v263_v19 }
  0x72   : > { %1098 = vmatprep.mubr.f32.mxu0 %v264_v20 }
  0x75   : > { %1099 = vmatmul.mubr.f32.gmra.mxu0 %v265_v21 }
  0x76   : > { %1101 = vmatprep.mubr.f32.mxu0 %v266_v22 }
  0x79   : > { %1102 = vmatmul.mubr.f32.gmra.mxu0 %v267_v23 }
  0x7a   : > { %1104 = vmatprep.mubr.f32.mxu0 %v268_v24 }
  0x7d   : > { %1105 = vmatmul.mubr.f32.gmra.mxu0 %v269_v25 }
  0x7e   : > { %1107 = vmatprep.mubr.f32.mxu0 %v270_v26 }
  0x81   : > { %1108 = vmatmul.mubr.f32.gmra.mxu0 %v271_v27 }
  0x82   : > { %1110 = vmatprep.mubr.f32.mxu0 %v272_v28 }
  0x85   : > { %1111 = vmatmul.mubr.f32.gmra.mxu0 %v273_v29 }
  0x86   : > { %1113 = vmatprep.mubr.f32.mxu0 %v274_v30 }
  0x89   : > { %1114 = vmatmul.mubr.f32.gmra.mxu0 %v275_v31 }
  0x8a   : > { %1116 = vmatprep.mubr.f32.mxu0 %v276_v32 }
  0x8d   : > { %1117 = vmatmul.mubr.f32.gmra.mxu0 %v277_v33 }
  0x8e   : > { %1119 = vmatprep.mubr.f32.mxu0 %v278_v34 }
  0x91   : > { %1120 = vmatmul.mubr.f32.gmra.mxu0 %v279_v35 }
  0x92   : > { %1122 = vmatprep.mubr.f32.mxu0 %v280_v36 }
  0x95   : > { %1123 = vmatmul.mubr.f32.gmra.mxu0 %v281_v37 }
  0x96   : > { %1125 = vmatprep.mubr.f32.mxu0 %v282_v38 }
  0x99   : > { %1126 = vmatmul.mubr.f32.gmra.mxu0 %v283_v39 }
  0x9a   : > { %1128 = vmatprep.mubr.f32.mxu0 %v284_v40 }
  0x9d   : > { %1129 = vmatmul.mubr.f32.gmra.mxu0 %v285_v41 }
  0x9e   : > { %1131 = vmatprep.mubr.f32.mxu0 %v286_v42 }
  0xa1   : > { %1132 = vmatmul.mubr.f32.gmra.mxu0 %v287_v43 }
  0xa2   : > { %1134 = vmatprep.mubr.f32.mxu0 %v288_v44 }
  0xa5   : > { %1135 = vmatmul.mubr.f32.gmra.mxu0 %v289_v45 }
  0xa6   : > { %1137 = vmatprep.mubr.f32.mxu0 %v290_v46 }
  0xa9   : > { %1138 = vmatmul.mubr.f32.gmra.mxu0 %v291_v47 }
 0x12d   : > { %v1627_v49 = vpop.f32.mrf.mxu0 }
 0x12f   : > { %v1629_v50 = vpop.f32.mrf.mxu0 }
 0x131   : > { %v1631_v51 = vpop.f32.mrf.mxu0 }
 0x133   : > { %v1633_v52 = vpop.f32.mrf.mxu0 }
 0x135   : > { %v1635_v53 = vpop.f32.mrf.mxu0 }
 0x137   : > { %v1637_v54 = vpop.f32.mrf.mxu0 }
 0x139   : > { %v1103_v55 = vpop.f32.mrf.mxu0 }
 0x13b   : > { %v404_v56 = vpop.f32.mrf.mxu0 }
 0x13d   : > { %v1106_v57 = vpop.f32.mrf.mxu0 }
 0x13f   : > { %v414_v58 = vpop.f32.mrf.mxu0 }
 0x141   : > { %v1109_v59 = vpop.f32.mrf.mxu0 }
 0x143   : > { %v424_v60 = vpop.f32.mrf.mxu0 }
 0x145   : > { %v1112_v61 = vpop.f32.mrf.mxu0 }
 0x147   : > { %v434_v62 = vpop.f32.mrf.mxu0 }
 0x149   : > { %v1115_v63 = vpop.f32.mrf.mxu0 }
 0x14b   : > { %v444_v0 = vpop.f32.mrf.mxu0 }
 0x14d   : > { %v1639_v1 = vpop.f32.mrf.mxu0 }
 0x14f   : > { %v1641_v2 = vpop.f32.mrf.mxu0 }
 0x151   : > { %v1121_v3 = vpop.f32.mrf.mxu0 }
 0x153   : > { %v1643_v4 = vpop.f32.mrf.mxu0 }
 0x155   : > { %v1124_v5 = vpop.f32.mrf.mxu0 }
 0x157   : > { %v474_v6 = vpop.f32.mrf.mxu0 }
 0x159   : > { %v1127_v7 = vpop.f32.mrf.mxu0 }
 0x15b   : > { %v484_v8 = vpop.f32.mrf.mxu0 }
 0x15d   : > { %v1130_v9 = vpop.f32.mrf.mxu0 }
 0x15f   : > { %v494_v10 = vpop.f32.mrf.mxu0 }
 0x161   : > { %v1133_v11 = vpop.f32.mrf.mxu0 }
 0x163   : > { %v504_v12 = vpop.f32.mrf.mxu0 }
 0x165   : > { %v1136_v13 = vpop.f32.mrf.mxu0 }
 0x167   : > { %v514_v14 = vpop.f32.mrf.mxu0 }
 0x169   : > { %v1139_v15 = vpop.f32.mrf.mxu0 }
 0x16a   : > { %1230 = vtanh.f32 %v1139_v15  ;;  %v611_v15 = vld [vmem:[%s1616_s6 + $0xf0] sm:$0xff] }
 0x16b   : > { %1232 = vtanh.f32 %v1115_v63  ;;  %v524_v16 = vpop.f32.mrf.mxu0  ;;  %v595_v63 = vld [vmem:[%s1616_s6 + $0x70] sm:$0xff] }
 0x16c   : > { %1234 = vtanh.f32 %v524_v16 }
 0x16d   : > { %1236 = vtanh.f32 %v444_v0  ;;  %v598_v0 = vld [vmem:[%s1616_s6 + $0x88] sm:$0xff] }
 0x16e   : > { %1238 = vtanh.f32 %v1136_v13  ;;  %v609_v13 = vld [vmem:[%s1616_s6 + $0xe0] sm:$0xff] }
 0x16f   : > { %1240 = vtanh.f32 %v1112_v61  ;;  %v593_v61 = vld [vmem:[%s1616_s6 + $0x60] sm:$0xff] }
 0x170   : > { %1242 = vtanh.f32 %v514_v14  ;;  %v612_v14 = vld [vmem:[%s1616_s6 + $0xf8] sm:$0xff] }
 0x171   : > { %1244 = vtanh.f32 %v434_v62  ;;  %v596_v62 = vld [vmem:[%s1616_s6 + $0x78] sm:$0xff] }
 0x172   : > { %1246 = vtanh.f32 %v1133_v11  ;;  %v607_v11 = vld [vmem:[%s1616_s6 + $0xd0] sm:$0xff] }
 0x173   : > { %1248 = vtanh.f32 %v1109_v59  ;;  %v591_v59 = vld [vmem:[%s1616_s6 + $0x50] sm:$0xff] }
 0x174   : > { %1250 = vtanh.f32 %v504_v12  ;;  %v610_v12 = vld [vmem:[%s1616_s6 + $0xe8] sm:$0xff] }
 0x175   : > { %1252 = vtanh.f32 %v424_v60  ;;  %v594_v60 = vld [vmem:[%s1616_s6 + $0x68] sm:$0xff] }
 0x176   : > { %1254 = vtanh.f32 %v1130_v9  ;;  %v605_v9 = vld [vmem:[%s1616_s6 + $0xc0] sm:$0xff] }
 0x177   : > { %v1231_v17 = vpop.eup %1230  ;;  %1256 = vtanh.f32 %v1106_v57  ;;  %v589_v57 = vld [vmem:[%s1616_s6 + $0x40] sm:$0xff] }
 0x178   : > { %v1233_v18 = vpop.eup %1232  ;;  %1258 = vtanh.f32 %v494_v10  ;;  %980 = vmatprep.subr.mxu1 %v1231_v17  ;;  %v608_v10 = vld [vmem:[%s1616_s6 + $0xd8] sm:$0xff] }
 0x179   : > { %v1235_v19 = vpop.eup %1234  ;;  %1260 = vtanh.f32 %v414_v58  ;;  %981 = vmatpush3.msra.mxu1 %v1233_v18  ;;  %v592_v58 = vld [vmem:[%s1616_s6 + $0x58] sm:$0xff] }
 0x17a   : > { %v1237_v20 = vpop.eup %1236  ;;  %1262 = vtanh.f32 %v1127_v7  ;;  %982 = vmatprep.subr.mxu1 %v1235_v19  ;;  %v603_v7 = vld [vmem:[%s1616_s6 + $0xb0] sm:$0xff] }
 0x17b   : > { %v1239_v21 = vpop.eup %1238  ;;  %1264 = vtanh.f32 %v1103_v55  ;;  %983 = vmatpush3.msra.mxu1 %v1237_v20  ;;  %v587_v55 = vld [vmem:[%s1616_s6 + $0x30] sm:$0xff] }
 0x17c   : > { %v1241_v22 = vpop.eup %1240  ;;  %1266 = vtanh.f32 %v484_v8  ;;  %984 = vmatprep.subr.mxu1 %v1239_v21  ;;  %v606_v8 = vld [vmem:[%s1616_s6 + $0xc8] sm:$0xff] }
 0x17d   : > { %v1243_v23 = vpop.eup %1242  ;;  %1268 = vtanh.f32 %v404_v56  ;;  %985 = vmatpush3.msra.mxu1 %v1241_v22  ;;  %v590_v56 = vld [vmem:[%s1616_s6 + $0x48] sm:$0xff] }
 0x17e   : > { %v1245_v24 = vpop.eup %1244  ;;  %1270 = vtanh.f32 %v1124_v5  ;;  %986 = vmatprep.subr.mxu1 %v1243_v23  ;;  %v601_v5 = vld [vmem:[%s1616_s6 + $0xa0] sm:$0xff] }
 0x17f   : > { %v1247_v25 = vpop.eup %1246  ;;  %1272 = vtanh.f32 %v1635_v53  ;;  %987 = vmatpush3.msra.mxu1 %v1245_v24  ;;  %v585_v53 = vld [vmem:[%s1616_s6 + $0x20] sm:$0xff] }
 0x180   : > { %v1249_v26 = vpop.eup %1248  ;;  %1274 = vtanh.f32 %v474_v6  ;;  %988 = vmatprep.subr.mxu1 %v1247_v25  ;;  %v604_v6 = vld [vmem:[%s1616_s6 + $0xb8] sm:$0xff] }
 0x181   : > { %v1251_v27 = vpop.eup %1250  ;;  %1276 = vtanh.f32 %v1637_v54  ;;  %989 = vmatpush3.msra.mxu1 %v1249_v26  ;;  %v588_v54 = vld [vmem:[%s1616_s6 + $0x38] sm:$0xff] }
 0x182   : > { %v1253_v28 = vpop.eup %1252  ;;  %1278 = vtanh.f32 %v1121_v3  ;;  %990 = vmatprep.subr.mxu1 %v1251_v27  ;;  %v599_v3 = vld [vmem:[%s1616_s6 + $0x90] sm:$0xff] }
 0x183   : > { %v1255_v29 = vpop.eup %1254  ;;  %1280 = vtanh.f32 %v1631_v51  ;;  %991 = vmatpush3.msra.mxu1 %v1253_v28  ;;  %v583_v51 = vld [vmem:[%s1616_s6 + $0x10] sm:$0xff] }
 0x184   : > { %v1257_v30 = vpop.eup %1256  ;;  %1282 = vtanh.f32 %v1643_v4  ;;  %992 = vmatprep.subr.mxu1 %v1255_v29  ;;  %v602_v4 = vld [vmem:[%s1616_s6 + $0xa8] sm:$0xff] }
 0x185   : > { %v1259_v31 = vpop.eup %1258  ;;  %1284 = vtanh.f32 %v1633_v52  ;;  %993 = vmatpush3.msra.mxu1 %v1257_v30  ;;  %v586_v52 = vld [vmem:[%s1616_s6 + $0x28] sm:$0xff] }
 0x186   : > { %v1261_v32 = vpop.eup %1260  ;;  %1286 = vtanh.f32 %v1639_v1  ;;  %994 = vmatprep.subr.mxu1 %v1259_v31  ;;  %v597_v1 = vld [vmem:[%s1616_s6 + $0x80] sm:$0xff] }
 0x187   : > { %v1263_v33 = vpop.eup %1262  ;;  %1288 = vtanh.f32 %v1627_v49  ;;  %995 = vmatpush3.msra.mxu1 %v1261_v32 }
 0x188   : > { %v1265_v34 = vpop.eup %1264  ;;  %1290 = vtanh.f32 %v1641_v2  ;;  %996 = vmatprep.subr.mxu1 %v1263_v33  ;;  %v600_v2 = vld [vmem:[%s1616_s6 + $0x98] sm:$0xff] }
 0x189   : > { %v1267_v35 = vpop.eup %1266  ;;  %1292 = vtanh.f32 %v1629_v50  ;;  %997 = vmatpush3.msra.mxu1 %v1265_v34  ;;  %v584_v50 = vld [vmem:[%s1616_s6 + $0x18] sm:$0xff] }
 0x18a   : > { %v1269_v36 = vpop.eup %1268  ;;  %998 = vmatprep.subr.mxu1 %v1267_v35 }
 0x18b   : > { %v1271_v37 = vpop.eup %1270  ;;  %999 = vmatpush3.msra.mxu1 %v1269_v36 }
 0x18c   : > { %v1273_v38 = vpop.eup %1272  ;;  %1000 = vmatprep.subr.mxu1 %v1271_v37 }
 0x18d   : > { %v1275_v39 = vpop.eup %1274  ;;  %1001 = vmatpush3.msra.mxu1 %v1273_v38 }
 0x18e   : > { %v1277_v40 = vpop.eup %1276  ;;  %1002 = vmatprep.subr.mxu1 %v1275_v39 }
 0x18f   : > { %v1279_v41 = vpop.eup %1278  ;;  %1003 = vmatpush3.msra.mxu1 %v1277_v40 }
 0x190   : > { %v1281_v42 = vpop.eup %1280  ;;  %1004 = vmatprep.subr.mxu1 %v1279_v41 }
 0x191   : > { %v1283_v43 = vpop.eup %1282  ;;  %1005 = vmatpush3.msra.mxu1 %v1281_v42 }
 0x192   : > { %v1285_v44 = vpop.eup %1284  ;;  %1006 = vmatprep.subr.mxu1 %v1283_v43 }
 0x193   : > { %v1287_v45 = vpop.eup %1286  ;;  %1007 = vmatpush3.msra.mxu1 %v1285_v44 }
 0x194   : > { %v1289_v46 = vpop.eup %1288  ;;  %1008 = vmatprep.subr.mxu1 %v1287_v45 }
 0x195   : > { %v1291_v47 = vpop.eup %1290  ;;  %1009 = vmatpush3.msra.mxu1 %v1289_v46 }
 0x196   : > { %v1293_v49 = vpop.eup %1292  ;;  %1010 = vmatprep.subr.mxu1 %v1291_v47 }
 0x197   : > { %1011 = vmatpush3.msra.mxu1 %v1293_v49 }
 0x198   : > { %678 = vmatmul.mubr.f32.vlgmr.msra.gmra.mxu1 %v581_v48 }
 0x199   : > { %682 = vmatprep.mubr.f32.mxu1 %v584_v50 }
 0x19c   : > { %683 = vmatmul.mubr.f32.gmra.mxu1 %v583_v51 }
 0x19d   : > { %687 = vmatprep.mubr.f32.mxu1 %v586_v52 }
 0x1a0   : > { %688 = vmatmul.mubr.f32.gmra.mxu1 %v585_v53 }
 0x1a1   : > { %692 = vmatprep.mubr.f32.mxu1 %v588_v54 }
 0x1a4   : > { %693 = vmatmul.mubr.f32.gmra.mxu1 %v587_v55 }
 0x1a5   : > { %697 = vmatprep.mubr.f32.mxu1 %v590_v56 }
 0x1a8   : > { %698 = vmatmul.mubr.f32.gmra.mxu1 %v589_v57 }
 0x1a9   : > { %702 = vmatprep.mubr.f32.mxu1 %v592_v58 }
 0x1ac   : > { %703 = vmatmul.mubr.f32.gmra.mxu1 %v591_v59 }
 0x1ad   : > { %707 = vmatprep.mubr.f32.mxu1 %v594_v60 }
 0x1b0   : > { %708 = vmatmul.mubr.f32.gmra.mxu1 %v593_v61 }
 0x1b1   : > { %712 = vmatprep.mubr.f32.mxu1 %v596_v62 }
 0x1b4   : > { %713 = vmatmul.mubr.f32.gmra.mxu1 %v595_v63 }
 0x1b5   : > { %717 = vmatprep.mubr.f32.mxu1 %v598_v0 }
 0x1b8   : > { %718 = vmatmul.mubr.f32.gmra.mxu1 %v597_v1 }
 0x1b9   : > { %722 = vmatprep.mubr.f32.mxu1 %v600_v2 }
 0x1bc   : > { %723 = vmatmul.mubr.f32.gmra.mxu1 %v599_v3 }
 0x1bd   : > { %727 = vmatprep.mubr.f32.mxu1 %v602_v4 }
 0x1c0   : > { %728 = vmatmul.mubr.f32.gmra.mxu1 %v601_v5 }
 0x1c1   : > { %732 = vmatprep.mubr.f32.mxu1 %v604_v6 }
 0x1c4   : > { %733 = vmatmul.mubr.f32.gmra.mxu1 %v603_v7 }
 0x1c5   : > { %737 = vmatprep.mubr.f32.mxu1 %v606_v8 }
 0x1c8   : > { %738 = vmatmul.mubr.f32.gmra.mxu1 %v605_v9 }
 0x1c9   : > { %742 = vmatprep.mubr.f32.mxu1 %v608_v10 }
 0x1cc   : > { %743 = vmatmul.mubr.f32.gmra.mxu1 %v607_v11 }
 0x1cd   : > { %747 = vmatprep.mubr.f32.mxu1 %v610_v12 }
 0x1d0   : > { %748 = vmatmul.mubr.f32.gmra.mxu1 %v609_v13 }
 0x1d1   : > { %752 = vmatprep.mubr.f32.mxu1 %v612_v14 }
 0x1d4   : > { %753 = vmatmul.mubr.f32.gmra.mxu1 %v611_v15 }
 0x258   : > { %v1012_v16 = vpop.f32.mrf.mxu1 }
 0x25a   : > { %v1013_v17 = vpop.f32.mrf.mxu1 }
 0x25b   : > { %v1014_v18 = vadd.f32 %v1013_v17, %v1012_v16 }
 0x25c   : > { %v1015_v19 = vpop.f32.mrf.mxu1 }
 0x25d   : > { %774 = vst [vmem:[%s1686_s22] sm:$0xff] %v1014_v18 }
 0x25e   : > { %v1016_v20 = vpop.f32.mrf.mxu1 }
 0x25f   : > { %v1017_v21 = vadd.f32 %v1016_v20, %v1015_v19 }
 0x260   : > { %v1018_v22 = vpop.f32.mrf.mxu1 }
 0x261   : > { %775 = vst [vmem:[%s1686_s22 + $0x8] sm:$0xff] %v1017_v21 }
 0x262   : > { %v1019_v23 = vpop.f32.mrf.mxu1 }
 0x263   : > { %v1020_v24 = vadd.f32 %v1019_v23, %v1018_v22 }
 0x264   : > { %v1021_v25 = vpop.f32.mrf.mxu1 }
 0x265   : > { %776 = vst [vmem:[%s1686_s22 + $0x10] sm:$0xff] %v1020_v24 }
 0x266   : > { %v1022_v26 = vpop.f32.mrf.mxu1 }
 0x267   : > { %v1023_v27 = vadd.f32 %v1022_v26, %v1021_v25 }
 0x268   : > { %v1024_v28 = vpop.f32.mrf.mxu1 }
 0x269   : > { %777 = vst [vmem:[%s1686_s22 + $0x18] sm:$0xff] %v1023_v27 }
 0x26a   : > { %v1025_v29 = vpop.f32.mrf.mxu1 }
 0x26b   : > { %v1026_v30 = vadd.f32 %v1025_v29, %v1024_v28 }
 0x26c   : > { %v1027_v31 = vpop.f32.mrf.mxu1 }
 0x26d   : > { %778 = vst [vmem:[%s1686_s22 + $0x20] sm:$0xff] %v1026_v30 }
 0x26e   : > { %v1028_v32 = vpop.f32.mrf.mxu1 }
 0x26f   : > { %v1029_v33 = vadd.f32 %v1028_v32, %v1027_v31 }
 0x270   : > { %v1030_v34 = vpop.f32.mrf.mxu1 }
 0x271   : > { %779 = vst [vmem:[%s1686_s22 + $0x28] sm:$0xff] %v1029_v33 }
 0x272   : > { %v1031_v35 = vpop.f32.mrf.mxu1 }
 0x273   : > { %v1032_v36 = vadd.f32 %v1031_v35, %v1030_v34 }
 0x274   : > { %v1033_v37 = vpop.f32.mrf.mxu1 }
 0x275   : > { %780 = vst [vmem:[%s1686_s22 + $0x30] sm:$0xff] %v1032_v36 }
 0x276   : > { %v1034_v38 = vpop.f32.mrf.mxu1 }
 0x277   : > { %v1035_v39 = vadd.f32 %v1034_v38, %v1033_v37 }
 0x278   : > { %v1036_v40 = vpop.f32.mrf.mxu1 }
 0x279   : > { %781 = vst [vmem:[%s1686_s22 + $0x38] sm:$0xff] %v1035_v39 }
 0x27a   : > { %v1037_v41 = vpop.f32.mrf.mxu1 }
 0x27b   : > { %v1038_v42 = vadd.f32 %v1037_v41, %v1036_v40 }
 0x27c   : > { %v1039_v43 = vpop.f32.mrf.mxu1 }
 0x27d   : > { %782 = vst [vmem:[%s1686_s22 + $0x40] sm:$0xff] %v1038_v42 }
 0x27e   : > { %v1040_v44 = vpop.f32.mrf.mxu1 }
 0x27f   : > { %v1041_v45 = vadd.f32 %v1040_v44, %v1039_v43 }
 0x280   : > { %v1042_v46 = vpop.f32.mrf.mxu1 }
 0x281   : > { %783 = vst [vmem:[%s1686_s22 + $0x48] sm:$0xff] %v1041_v45 }
 0x282   : > { %v1043_v47 = vpop.f32.mrf.mxu1 }
 0x283   : > { %v1044_v48 = vadd.f32 %v1043_v47, %v1042_v46 }
 0x284   : > { %v1045_v49 = vpop.f32.mrf.mxu1 }
 0x285   : > { %784 = vst [vmem:[%s1686_s22 + $0x50] sm:$0xff] %v1044_v48 }
 0x286   : > { %v1046_v50 = vpop.f32.mrf.mxu1 }
 0x287   : > { %v1047_v51 = vadd.f32 %v1046_v50, %v1045_v49 }
 0x288   : > { %v1048_v52 = vpop.f32.mrf.mxu1 }
 0x289   : > { %785 = vst [vmem:[%s1686_s22 + $0x58] sm:$0xff] %v1047_v51 }
 0x28a   : > { %v1049_v53 = vpop.f32.mrf.mxu1 }
 0x28b   : > { %v1050_v54 = vadd.f32 %v1049_v53, %v1048_v52 }
 0x28c   : > { %v1051_v55 = vpop.f32.mrf.mxu1 }
 0x28d   : > { %786 = vst [vmem:[%s1686_s22 + $0x60] sm:$0xff] %v1050_v54 }
 0x28e   : > { %v1052_v56 = vpop.f32.mrf.mxu1 }
 0x28f   : > { %v1053_v57 = vadd.f32 %v1052_v56, %v1051_v55 }
 0x290   : > { %v1054_v58 = vpop.f32.mrf.mxu1 }
 0x291   : > { %787 = vst [vmem:[%s1686_s22 + $0x68] sm:$0xff] %v1053_v57 }
 0x292   : > { %v1055_v59 = vpop.f32.mrf.mxu1 }
 0x293   : > { %v1056_v60 = vadd.f32 %v1055_v59, %v1054_v58 }
 0x294   : > { %v1057_v61 = vpop.f32.mrf.mxu1 }
 0x295   : > { %788 = vst [vmem:[%s1686_s22 + $0x70] sm:$0xff] %v1056_v60 }
 0x296   : > { %v1058_v62 = vpop.f32.mrf.mxu1 }
 0x297   : > { %v1059_v63 = vadd.f32 %v1058_v62, %v1057_v61 }
 0x299   : > { %789 = vst [vmem:[%s1686_s22 + $0x78] sm:$0xff] %v1059_v63 }
 0x29a   : > { %1387 = shalt.err (!%p1384_p5)
}
 0x29b   : > { %s1388_s27 = scalar_lea.hbm %s1708_s8, 2048  ;;  %s1392_s4 = scalar_lea.hbm %s1762_s3, 4096 }
 0x29c   : > { %p1389_p10 = scmp.ne.s32.totalorder %s1708_s8, %s1388_s27  ;;  %p1393_p6 = scmp.lt.s32.totalorder %s1708_s8, %s1762_s3 }
 0x29d   : > { %p1394_p12 = scmp.lt.s32.totalorder %s1392_s4, %s1388_s27 }
 0x29e   : > { %p1390_p1 = pnand %p1389_p10, %p1585_p7 }
 0x29f   : > { %p1395_p3 = por %p1394_p12, %p1393_p6 }
 0x2a0   : > { %p1391_p4 = pneg %p1390_p1 }
 0x2a2   : > { %p1396_p8 = pnand %p1395_p3, %p1391_p4 }
 0x2a4   : > { %1399 = shalt.err (!%p1396_p8)
}
 0x2a5   : > { %s1468_s22 = smov 128   ;;  %s1469_s24 = smov 8  }
 0x2a6   : > { %1150 = dma.vmem_to_hbm [thread:$0]  (%p1585_p7), %s1710_s5, 2048, %s1708_s8, %s791_s9, %s1468_s22, %s1468_s22, %s1469_s24  }
 0x2a7 PF: > { %s819_s7 = sand.u32 1, %s1438_s12   ;;  %p1776_p9 = scmp.ne.s32.totalorder %s1769_s23, 0 }
 0x2a8   : > { %p1777_p11 = scmp.ge.s32.totalorder %s1458_s17, 2  ;;  %s820_s21 = scalar_lea.sflag [#allocation4], %s819_s7 }
 0x2aa   : > { %p1164_p2 = pnand %p1777_p11, %p1776_p9 }
 0x2ac   : > { %p1165_p13 = pneg %p1164_p2 }
 0x2ae   : > { %1433 = dma.done.wait (%p1165_p13), %s820_s21, 2048  }
 0x2af   : > { %1435 = vsyncadd (%p1165_p13), %s820_s21, 4294965248  ;;  %s20_s17 = sadd.s32 1, %s1458_s17   ;;  %s1778_s12 = smov %s1442_s13 }
 0x2b0   : > { %p17_p0 = scmp.ge.s32.totalorder %s20_s17, 4   ;;  %s1779_s13 = smov %s1446_s14 }
 0x2b1   : > { %s1780_s14 = smov %s1594_s29  ;;  %s1781_s15 = smov %s1454_s16 }
 0x2b2   : > { %s1782_s16 = smov %s1784_s11  ;;  %19 = sbr.rel (!%p17_p0) target bundleno = 7 (0x7), region = 90 }
 0x2b7   :  { %825 = vsyncpa [#allocation3], 1 }
 0x2b8   :  { %827 = vsyncpa [#allocation3 + $0x1], 1 }
 0x2b9   :  { %828 = vsyncpa [#allocation6], 1 }
 0x2ba   :  { %829 = vsyncpa [#allocation4], 1 }
 0x2bb   :  { %831 = vsyncpa [#allocation4 + $0x1], 1 }

</bundles_post_ra>
